<compile_context>
chip_gen: v6e
topology: v6e:2x2x1
jax: 0.10.0
libtpu: 0.0.40
codegen_flags: <defaults>
</compile_context>

<pallas_src>
import jax
import jax.numpy as jnp
from jax.experimental import pallas as pl
from jax.experimental.pallas import tpu as pltpu

_MIB = 1024 * 1024


# ----------------------------------------------------------------------------
# tiling / compiler-param helpers
# ----------------------------------------------------------------------------
def _round_up(x, m):
    return ((x + m - 1) // m) * m


def _default_target_block_bytes():
    # ~1-4 MiB per input block keeps the per-grid-step overhead negligible
    # against HBM DMA while the double-buffered working set stays well inside
    # every generation's VMEM (v7x: 64 MiB physical / 32 MiB scoped default).
    try:
        cap = int(getattr(pltpu.get_tpu_info(), "vmem_capacity_bytes", 64 * _MIB))
    except Exception:
        cap = 64 * _MIB
    return int(min(4 * _MIB, max(1 * _MIB, cap // 32)))


def _pick_tiling(hw, rows_per_lane, n_par=2, target_block_bytes=None,
                 max_lanes=32768):
    """Return (tile_lanes, n_par, n_inner, hw_padded).

    rows_per_lane: f32 words carried per lane of the heaviest input block
    (N*C for (N, C, T) blocks, N for (N, T) blocks).
    """
    if target_block_bytes is None:
        target_block_bytes = _default_target_block_bytes()
    t = int(target_block_bytes) // max(4 * rows_per_lane, 4)
    t = min(t, max_lanes, _round_up(hw, 128))
    t = max(128, (t // 128) * 128)
    nb = pl.cdiv(hw, t)
    if nb < n_par:
        n_par = 1
    nb = n_par * pl.cdiv(nb, n_par)
    return t, n_par, nb // n_par, nb * t


def _vmem_limit_bytes(block_in_bytes, block_out_bytes, scratch_bytes):
    # 2x for double buffering of every pipelined block, plus scratch and slack.
    need = 2 * (block_in_bytes + block_out_bytes) + scratch_bytes + 2 * _MIB
    return int(min(max(need, 32 * _MIB), 48 * _MIB))


def _compiler_params(vmem_bytes):
    # Leading axis: independent spatial chunks -> "parallel" (v7x megacore).
    # Inner axis carries the elementwise accumulation -> "arbitrary".
    return pltpu.CompilerParams(
        dimension_semantics=("parallel", "arbitrary"),
        vmem_limit_bytes=vmem_bytes,
    )


def _log_softmax_c(x):
    # log_softmax over the channel axis (axis=1) of a (N, C, T) f32 tile.
    m = jnp.max(x, axis=1, keepdims=True)
    s = x - m
    lse = jnp.log(jnp.sum(jnp.exp(s), axis=1, keepdims=True))
    return s - lse


def _write_partials(part_ref, accs):
    # One-time (per parallel chunk) reduce of the elementwise accumulators to
    # scalars, broadcast into lane-dense (8, 128) slots of the partial output.
    for q, acc in enumerate(accs):
        part_ref[0, q] = jnp.broadcast_to(jnp.sum(acc[...]), (8, 128))


# ----------------------------------------------------------------------------
# semseg / human_parts: finalize = log_softmax(dim=1); loss = nll_loss(ignore=-1)
# ----------------------------------------------------------------------------
def _semseg_kernel(logits_ref, labels_ref, logp_ref, part_ref, num_acc, cnt_acc):
    i = pl.program_id(1)

    @pl.when(i == 0)
    def _init():
        num_acc[...] = jnp.zeros_like(num_acc)
        cnt_acc[...] = jnp.zeros_like(cnt_acc)

    x = logits_ref[...].astype(jnp.float32)               # (N, C, T)
    logp = _log_softmax_c(x)
    logp_ref[...] = logp.astype(logp_ref.dtype)

    labels = labels_ref[...].astype(jnp.int32)            # (N, T); torch .long() parity
    n, c, t = x.shape
    # TODO(synk): labels outside [0, C) other than -1 are counted as valid but
    # contribute 0 to the numerator (torch nll_loss would raise instead).
    picked = jnp.zeros((n, t), jnp.float32)
    for cls in range(c):                                   # static unroll; C is small
        picked = picked + jnp.where(labels == cls, logp[:, cls, :], 0.0)

    num_acc[...] += picked
    cnt_acc[...] += (labels != -1).astype(jnp.float32)

    @pl.when(i == pl.num_programs(1) - 1)
    def _fin():
        _write_partials(part_ref, (num_acc, cnt_acc))


def _semseg_loss(logits_nchw, labels_nhw, zero_if_all_ignored=False,
                 target_block_bytes=None):
    n, c, h, w = logits_nchw.shape
    hw = h * w
    t, n_par, n_inner, hw_pad = _pick_tiling(hw, n * c,
                                             target_block_bytes=target_block_bytes)

    logits = logits_nchw.reshape(n, c, hw)                 # native dtype; upcast in kernel
    labels = labels_nhw.reshape(n, hw)                     # native dtype; no wrapper astype
    if hw_pad != hw:
        pad = hw_pad - hw
        logits = jnp.pad(logits, ((0, 0), (0, 0), (0, pad)))
        labels = jnp.pad(labels, ((0, 0), (0, pad)), constant_values=-1)

    isz = logits.dtype.itemsize
    lsz = labels.dtype.itemsize
    blk_in = n * c * t * isz + n * t * lsz
    blk_out = n * c * t * isz + 2 * 8 * 128 * 4
    scratch = 2 * 8 * t * 4
    cost = pl.CostEstimate(
        flops=int(10 * n * c * hw_pad),
        transcendentals=int(n * (c + 1) * hw_pad),
        bytes_accessed=int(2 * n * c * hw_pad * isz + n * hw_pad * lsz),
    )

    logp, part = pl.pallas_call(
        _semseg_kernel,
        grid=(n_par, n_inner),
        in_specs=[
            pl.BlockSpec((n, c, t), lambda p, i: (0, 0, p * n_inner + i)),
            pl.BlockSpec((n, t), lambda p, i: (0, p * n_inner + i)),
        ],
        out_specs=(
            pl.BlockSpec((n, c, t), lambda p, i: (0, 0, p * n_inner + i)),
            pl.BlockSpec((1, 2, 8, 128), lambda p, i: (p, 0, 0, 0)),
        ),
        out_shape=(
            jax.ShapeDtypeStruct((n, c, hw_pad), logits.dtype),
            jax.ShapeDtypeStruct((n_par, 2, 8, 128), jnp.float32),
        ),
        scratch_shapes=[pltpu.VMEM((n, t), jnp.float32),
                        pltpu.VMEM((n, t), jnp.float32)],
        compiler_params=_compiler_params(_vmem_limit_bytes(blk_in, blk_out, scratch)),
        cost_estimate=cost,
    )(logits, labels)

    num = jnp.sum(part[:, 0, 0, 0])
    cnt = jnp.sum(part[:, 1, 0, 0])
    loss = -num / cnt
    if zero_if_all_ignored:
        # human_parts special case: (gt == -1).all() -> loss = 0.0
        loss = jnp.where(cnt > 0.0, loss, jnp.zeros_like(loss))
    if hw_pad != hw:
        logp = logp[:, :, :hw]
    return logp.reshape(n, c, h, w), loss


# ----------------------------------------------------------------------------
# depth: finalize = identity; loss = sum(|p-g| * mask) / count_nonzero(mask)
# ----------------------------------------------------------------------------
def _depth2d_kernel(pred_ref, gt_ref, part_ref, num_acc, cnt_acc):
    # C == 1 fast path: channel axis dropped, refs are (N, T).
    i = pl.program_id(1)

    @pl.when(i == 0)
    def _init():
        num_acc[...] = jnp.zeros_like(num_acc)
        cnt_acc[...] = jnp.zeros_like(cnt_acc)

    pred = pred_ref[...].astype(jnp.float32)
    gt = gt_ref[...].astype(jnp.float32)
    mask = (gt != 0.0).astype(jnp.float32)
    num_acc[...] += jnp.abs(pred - gt) * mask
    cnt_acc[...] += mask

    @pl.when(i == pl.num_programs(1) - 1)
    def _fin():
        _write_partials(part_ref, (num_acc, cnt_acc))


def _depth3d_kernel(pred_ref, gt_ref, part_ref, num_acc, cnt_acc):
    i = pl.program_id(1)

    @pl.when(i == 0)
    def _init():
        num_acc[...] = jnp.zeros_like(num_acc)
        cnt_acc[...] = jnp.zeros_like(cnt_acc)

    pred = pred_ref[...].astype(jnp.float32)                    # (N, C, T)
    gt = gt_ref[...].astype(jnp.float32)
    # TODO(synk): torch parity -- validity mask is (sum over channels != 0), so
    # channel values cancelling to exactly zero are treated as masked, like torch.
    mask = (jnp.sum(gt, axis=1) != 0.0).astype(jnp.float32)     # (N, T)
    num_acc[...] += jnp.sum(jnp.abs(pred - gt), axis=1) * mask
    cnt_acc[...] += mask

    @pl.when(i == pl.num_programs(1) - 1)
    def _fin():
        _write_partials(part_ref, (num_acc, cnt_acc))


def _depth_loss(pred_nchw, gt_nchw, target_block_bytes=None):
    n, c, h, w = pred_nchw.shape
    hw = h * w
    t, n_par, n_inner, hw_pad = _pick_tiling(hw, n * c,
                                             target_block_bytes=target_block_bytes)
    isz = pred_nchw.dtype.itemsize

    if c == 1:
        pred = pred_nchw.reshape(n, hw)
        gt = gt_nchw.reshape(n, hw)
        if hw_pad != hw:
            pad = hw_pad - hw
            pred = jnp.pad(pred, ((0, 0), (0, pad)))
            gt = jnp.pad(gt, ((0, 0), (0, pad)))          # gt == 0 -> masked out
        kernel = _depth2d_kernel
        in_specs = [pl.BlockSpec((n, t), lambda p, i: (0, p * n_inner + i)),
                    pl.BlockSpec((n, t), lambda p, i: (0, p * n_inner + i))]
        blk_in = 2 * n * t * isz
    else:
        pred = pred_nchw.reshape(n, c, hw)
        gt = gt_nchw.reshape(n, c, hw)
        if hw_pad != hw:
            pad = hw_pad - hw
            pred = jnp.pad(pred, ((0, 0), (0, 0), (0, pad)))
            gt = jnp.pad(gt, ((0, 0), (0, 0), (0, pad)))
        kernel = _depth3d_kernel
        in_specs = [pl.BlockSpec((n, c, t), lambda p, i: (0, 0, p * n_inner + i)),
                    pl.BlockSpec((n, c, t), lambda p, i: (0, 0, p * n_inner + i))]
        blk_in = 2 * n * c * t * isz

    cost = pl.CostEstimate(flops=int(5 * n * c * hw_pad), transcendentals=0,
                           bytes_accessed=int(2 * n * c * hw_pad * isz))
    part = pl.pallas_call(
        kernel,
        grid=(n_par, n_inner),
        in_specs=in_specs,
        out_specs=pl.BlockSpec((1, 2, 8, 128), lambda p, i: (p, 0, 0, 0)),
        out_shape=jax.ShapeDtypeStruct((n_par, 2, 8, 128), jnp.float32),
        scratch_shapes=[pltpu.VMEM((n, t), jnp.float32),
                        pltpu.VMEM((n, t), jnp.float32)],
        compiler_params=_compiler_params(
            _vmem_limit_bytes(blk_in, 2 * 8 * 128 * 4, 2 * 8 * t * 4)),
        cost_estimate=cost,
    )(pred, gt)

    num = jnp.sum(part[:, 0, 0, 0])
    cnt = jnp.sum(part[:, 1, 0, 0])
    # TODO(synk): cnt == 0 (all pixels masked) gives NaN/Inf, same as torch.
    return num / cnt


# ----------------------------------------------------------------------------
# normals: finalize = x / ||x||_2 (dim=1); loss = 1 - sum(p*g*mask)/count(mask)
# ----------------------------------------------------------------------------
def _normals_kernel(pred_ref, gt_ref, predn_ref, part_ref, num_acc, cnt_acc):
    i = pl.program_id(1)

    @pl.when(i == 0)
    def _init():
        num_acc[...] = jnp.zeros_like(num_acc)
        cnt_acc[...] = jnp.zeros_like(cnt_acc)

    pred = pred_ref[...].astype(jnp.float32)                    # (N, 3, T)
    gt = gt_ref[...].astype(jnp.float32)
    # rsqrt + multiply instead of sqrt + divide (single EUP op, rest on VPU).
    # TODO(synk): zero-norm pred pixels give Inf/NaN (no eps), same as torch.
    inv = jax.lax.rsqrt(jnp.sum(pred * pred, axis=1, keepdims=True))   # (N, 1, T)
    pred_n = pred * inv
    predn_ref[...] = pred_n.astype(predn_ref.dtype)

    mask = (jnp.sum(gt, axis=1) != 0.0).astype(jnp.float32)            # (N, T)
    num_acc[...] += jnp.sum(pred_n * gt, axis=1) * mask
    cnt_acc[...] += mask

    @pl.when(i == pl.num_programs(1) - 1)
    def _fin():
        _write_partials(part_ref, (num_acc, cnt_acc))


def _normals_loss(pred_nchw, gt_nchw, target_block_bytes=None):
    n, c, h, w = pred_nchw.shape
    hw = h * w
    t, n_par, n_inner, hw_pad = _pick_tiling(hw, n * c,
                                             target_block_bytes=target_block_bytes)

    pred = pred_nchw.reshape(n, c, hw)
    gt = gt_nchw.reshape(n, c, hw)
    if hw_pad != hw:
        pad = hw_pad - hw
        # Pad pred with 1.0 so padded lanes get a finite norm (they are masked
        # out of the loss and sliced out of the returned tensor).
        pred = jnp.pad(pred, ((0, 0), (0, 0), (0, pad)), constant_values=1.0)
        gt = jnp.pad(gt, ((0, 0), (0, 0), (0, pad)))

    isz = pred.dtype.itemsize
    blk_in = 2 * n * c * t * isz
    blk_out = n * c * t * isz + 2 * 8 * 128 * 4
    cost = pl.CostEstimate(flops=int(8 * n * c * hw_pad),
                           transcendentals=int(n * hw_pad),
                           bytes_accessed=int(3 * n * c * hw_pad * isz))
    pred_n, part = pl.pallas_call(
        _normals_kernel,
        grid=(n_par, n_inner),
        in_specs=[pl.BlockSpec((n, c, t), lambda p, i: (0, 0, p * n_inner + i)),
                  pl.BlockSpec((n, c, t), lambda p, i: (0, 0, p * n_inner + i))],
        out_specs=(pl.BlockSpec((n, c, t), lambda p, i: (0, 0, p * n_inner + i)),
                   pl.BlockSpec((1, 2, 8, 128), lambda p, i: (p, 0, 0, 0))),
        out_shape=(jax.ShapeDtypeStruct((n, c, hw_pad), pred.dtype),
                   jax.ShapeDtypeStruct((n_par, 2, 8, 128), jnp.float32)),
        scratch_shapes=[pltpu.VMEM((n, t), jnp.float32),
                        pltpu.VMEM((n, t), jnp.float32)],
        compiler_params=_compiler_params(_vmem_limit_bytes(blk_in, blk_out, 2 * 8 * t * 4)),
        cost_estimate=cost,
    )(pred, gt)

    num = jnp.sum(part[:, 0, 0, 0])
    cnt = jnp.sum(part[:, 1, 0, 0])
    loss = 1.0 - num / cnt
    if hw_pad != hw:
        pred_n = pred_n[:, :, :hw]
    return pred_n.reshape(n, c, h, w), loss


# ----------------------------------------------------------------------------
# sal: finalize = identity; class-weighted cross entropy, ignore_index=-1,
#      class_weight = (1 - w_pos, w_pos), w_pos = num_neg / num_valid.
#      With labels in {-1,0,1}: num_neg == c0, num_valid == c0 + c1, so only
#      4 per-class partials (a0, a1, c0, c1) are streamed.
# ----------------------------------------------------------------------------
def _sal_kernel(logits_ref, labels_ref, part_ref, a0, a1, c0, c1):
    i = pl.program_id(1)

    @pl.when(i == 0)
    def _init():
        a0[...] = jnp.zeros_like(a0)
        a1[...] = jnp.zeros_like(a1)
        c0[...] = jnp.zeros_like(c0)
        c1[...] = jnp.zeros_like(c1)

    x = logits_ref[...].astype(jnp.float32)                 # (N, 2, T)
    logp = _log_softmax_c(x)

    labels = labels_ref[...]                                # (N, T) native dtype
    # TODO(synk): torch asserts max(masked_label) < 2 at runtime; here labels
    # are assumed to be exactly {-1, 0, 1} (no in-kernel assert).
    sel0 = labels == 0
    sel1 = labels == 1

    a0[...] += jnp.where(sel0, logp[:, 0, :], 0.0)
    a1[...] += jnp.where(sel1, logp[:, 1, :], 0.0)
    c0[...] += sel0.astype(jnp.float32)
    c1[...] += sel1.astype(jnp.float32)

    @pl.when(i == pl.num_programs(1) - 1)
    def _fin():
        _write_partials(part_ref, (a0, a1, c0, c1))


def _sal_loss(pred_nchw, gt_nhw, target_block_bytes=None):
    n, c, h, w = pred_nchw.shape                             # c == 2
    hw = h * w
    t, n_par, n_inner, hw_pad = _pick_tiling(hw, n * c,
                                             target_block_bytes=target_block_bytes)

    logits = pred_nchw.reshape(n, c, hw)
    labels = gt_nhw.reshape(n, hw)                           # native dtype; no astype
    if hw_pad != hw:
        pad = hw_pad - hw
        logits = jnp.pad(logits, ((0, 0), (0, 0), (0, pad)))
        labels = jnp.pad(labels, ((0, 0), (0, pad)), constant_values=-1)

    isz = logits.dtype.itemsize
    lsz = labels.dtype.itemsize
    blk_in = n * c * t * isz + n * t * lsz
    cost = pl.CostEstimate(flops=int(12 * n * c * hw_pad),
                           transcendentals=int(n * (c + 1) * hw_pad),
                           bytes_accessed=int(n * c * hw_pad * isz + n * hw_pad * lsz))
    part = pl.pallas_call(
        _sal_kernel,
        grid=(n_par, n_inner),
        in_specs=[pl.BlockSpec((n, c, t), lambda p, i: (0, 0, p * n_inner + i)),
                  pl.BlockSpec((n, t), lambda p, i: (0, p * n_inner + i))],
        out_specs=pl.BlockSpec((1, 4, 8, 128), lambda p, i: (p, 0, 0, 0)),
        out_shape=jax.ShapeDtypeStruct((n_par, 4, 8, 128), jnp.float32),
        scratch_shapes=[pltpu.VMEM((n, t), jnp.float32),
                        pltpu.VMEM((n, t), jnp.float32),
                        pltpu.VMEM((n, t), jnp.float32),
                        pltpu.VMEM((n, t), jnp.float32)],
        compiler_params=_compiler_params(
            _vmem_limit_bytes(blk_in, 4 * 8 * 128 * 4, 4 * 8 * t * 4)),
        cost_estimate=cost,
    )(logits, labels)

    a0 = jnp.sum(part[:, 0, 0, 0])
    a1 = jnp.sum(part[:, 1, 0, 0])
    c0 = jnp.sum(part[:, 2, 0, 0])
    c1 = jnp.sum(part[:, 3, 0, 0])
    w_pos = c0 / (c0 + c1)            # num_neg / num_valid
    w0 = 1.0 - w_pos
    w1 = w_pos
    # torch 'mean' reduction with class weights divides by the sum of weights
    # at the valid targets.
    return -(w0 * a0 + w1 * a1) / (w0 * c0 + w1 * c1)


# ----------------------------------------------------------------------------
# module equivalent
# ----------------------------------------------------------------------------
def _finalize_and_fit(task, pred_nchw, gt, target_block_bytes=None):
    if task in ("semseg", "human_parts"):
        return _semseg_loss(pred_nchw, gt,
                            zero_if_all_ignored=(task == "human_parts"),
                            target_block_bytes=target_block_bytes)
    elif task == "normals":
        return _normals_loss(pred_nchw, gt, target_block_bytes=target_block_bytes)
    elif task == "depth":
        return pred_nchw, _depth_loss(pred_nchw, gt, target_block_bytes=target_block_bytes)
    elif task == "sal":
        return pred_nchw, _sal_loss(pred_nchw, gt, target_block_bytes=target_block_bytes)
    else:
        raise NotImplementedError(task)


class SingleTaskLoss:
    """JAX/Pallas equivalent of the PyTorch SingleTaskLoss module (no parameters)."""

    def __init__(self, tasks, target_block_bytes=None):
        self.tasks = tasks
        self.target_block_bytes = target_block_bytes

    def __call__(self, pred, gt):
        finalized = {}
        losses_initial = {}
        for task in self.tasks:
            p, l = _finalize_and_fit(task, pred[task], gt[task],
                                     target_block_bytes=self.target_block_bytes)
            finalized[task] = p
            losses_initial[task] = l
        preds = {"initial": finalized, "final": finalized}
        losses = {"initial": losses_initial, "final": losses_initial}
        return losses, preds


# ----------------------------------------------------------------------------
# demo
# ----------------------------------------------------------------------------
if __name__ == "__main__":
    key = jax.random.PRNGKey(0)
    ks = jax.random.split(key, 12)
    # H*W = 4224: with the small demo block budget below, every task gets a
    # multi-step grid, the 2-way parallel split AND the pad-to-tile path.
    N, H, W = 2, 64, 66
    tasks = ["semseg", "human_parts", "depth", "normals", "sal"]

    pred = {
        "semseg": jax.random.normal(ks[0], (N, 4, H, W), jnp.float32),
        "human_parts": jax.random.normal(ks[1], (N, 4, H, W), jnp.float32),
        "depth": jax.random.normal(ks[2], (N, 1, H, W), jnp.float32),
        "normals": jax.random.normal(ks[3], (N, 3, H, W), jnp.float32) + 0.1,
        "sal": jax.random.normal(ks[4], (N, 2, H, W), jnp.float32),
    }
    gt = {
        "semseg": jax.random.randint(ks[5], (N, H, W), -1, 4).astype(jnp.int32),
        "human_parts": jax.random.randint(ks[6], (N, H, W), -1, 4).astype(jnp.int32),
        "depth": jax.random.normal(ks[7], (N, 1, H, W), jnp.float32)
        * jax.random.bernoulli(ks[8], 0.8, (N, 1, H, W)).astype(jnp.float32),
        "normals": jax.random.normal(ks[9], (N, 3, H, W), jnp.float32)
        * jax.random.bernoulli(ks[10], 0.8, (N, 1, H, W)).astype(jnp.float32),
        "sal": jax.random.randint(ks[11], (N, H, W), -1, 2).astype(jnp.float32),
    }

    # Tiny per-block byte budget for the demo only, so accumulation / padding /
    # parallel paths are exercised at small shapes.  Production default is the
    # chip-aware ~1-4 MiB budget (target_block_bytes=None).
    loss_fn = SingleTaskLoss(tasks, target_block_bytes=8 * 1024)
    losses, preds = loss_fn(pred, gt)
    jax.block_until_ready((losses, preds))
    print("KERNEL_OK")
</pallas_src>

<mosaic_0001>
module attributes {stable_mosaic.version = 11 : i64} {
  func.func @_semseg_kernel(%arg0: i32, %arg1: i32, %arg2: memref<2x4x256xf32, #tpu.memory_space<vmem>>, %arg3: memref<2x256xi32, #tpu.memory_space<vmem>>, %arg4: memref<2x4x256xf32, #tpu.memory_space<vmem>>, %arg5: memref<1x2x8x128xf32, #tpu.memory_space<vmem>>, %arg6: memref<2x256xf32, #tpu.memory_space<vmem>>, %arg7: memref<2x256xf32, #tpu.memory_space<vmem>>) attributes {dimension_semantics = [#tpu.dimension_semantics<parallel>, #tpu.dimension_semantics<arbitrary>], iteration_bounds = array<i64: 2, 9>, scalar_prefetch = 0 : i64, scratch_operands = 2 : i64, tpu.core_type = #tpu.core_type<tc>, window_params = [{transform_indices = @transform_0, window_bounds = array<i64: 2, 4, 256>}, {transform_indices = @transform_1, window_bounds = array<i64: 2, 256>}, {transform_indices = @transform_2, window_bounds = array<i64: 2, 4, 256>}, {transform_indices = @transform_3, window_bounds = array<i64: 1, 2, 8, 128>}]} {
    %c0_i32 = arith.constant 0 : i32
    %0 = arith.cmpi eq, %arg1, %c0_i32 : i32
    %1 = arith.extui %0 : i1 to i32
    %c0_i32_0 = arith.constant 0 : i32
    %2 = arith.cmpi ne, %1, %c0_i32_0 : i32
    scf.if %2 {
      %cst_24 = arith.constant 0.000000e+00 : f32
      %58 = vector.broadcast %cst_24 : f32 to vector<2x256xf32>
      %c0_25 = arith.constant 0 : index
      %c0_26 = arith.constant 0 : index
      %59 = vector.load %arg6[%c0_25, %c0_26] : memref<2x256xf32, #tpu.memory_space<vmem>>, vector<2x256xf32>
      tpu.vector_store %arg6[%c0_25, %c0_26], %58 {strides = array<i32>} : memref<2x256xf32, #tpu.memory_space<vmem>>, vector<2x256xf32>,
      %cst_27 = arith.constant 0.000000e+00 : f32
      %60 = vector.broadcast %cst_27 : f32 to vector<2x256xf32>
      %c0_28 = arith.constant 0 : index
      %c0_29 = arith.constant 0 : index
      %61 = vector.load %arg7[%c0_28, %c0_29] : memref<2x256xf32, #tpu.memory_space<vmem>>, vector<2x256xf32>
      tpu.vector_store %arg7[%c0_28, %c0_29], %60 {strides = array<i32>} : memref<2x256xf32, #tpu.memory_space<vmem>>, vector<2x256xf32>,
    } else {
    }
    %c0 = arith.constant 0 : index
    %c0_1 = arith.constant 0 : index
    %c0_2 = arith.constant 0 : index
    %3 = vector.load %arg2[%c0, %c0_1, %c0_2] : memref<2x4x256xf32, #tpu.memory_space<vmem>>, vector<2x4x256xf32>
    %cst = arith.constant dense<0xFF800000> : vector<2x256xf32>
    %4 = vector.multi_reduction <maximumf>, %3, %cst [1] : vector<2x4x256xf32> to vector<2x256xf32>
    %5 = vector.shape_cast %4 : vector<2x256xf32> to vector<2x1x256xf32>
    %6 = vector.broadcast %5 : vector<2x1x256xf32> to vector<2x4x256xf32>
    %7 = arith.subf %3, %6 : vector<2x4x256xf32>
    %8 = math.exp %7 : vector<2x4x256xf32>
    %cst_3 = arith.constant dense<0.000000e+00> : vector<2x256xf32>
    %9 = vector.multi_reduction <add>, %8, %cst_3 [1] : vector<2x4x256xf32> to vector<2x256xf32>
    %10 = vector.shape_cast %9 : vector<2x256xf32> to vector<2x1x256xf32>
    %11 = math.log %10 : vector<2x1x256xf32>
    %12 = vector.broadcast %11 : vector<2x1x256xf32> to vector<2x4x256xf32>
    %13 = arith.subf %7, %12 : vector<2x4x256xf32>
    %c0_4 = arith.constant 0 : index
    %c0_5 = arith.constant 0 : index
    %c0_6 = arith.constant 0 : index
    %14 = vector.load %arg4[%c0_4, %c0_5, %c0_6] : memref<2x4x256xf32, #tpu.memory_space<vmem>>, vector<2x4x256xf32>
    tpu.vector_store %arg4[%c0_4, %c0_5, %c0_6], %13 {strides = array<i32>} : memref<2x4x256xf32, #tpu.memory_space<vmem>>, vector<2x4x256xf32>,
    %c0_7 = arith.constant 0 : index
    %c0_8 = arith.constant 0 : index
    %15 = vector.load %arg3[%c0_7, %c0_8] : memref<2x256xi32, #tpu.memory_space<vmem>>, vector<2x256xi32>
    %cst_9 = arith.constant 0.000000e+00 : f32
    %16 = vector.broadcast %cst_9 : f32 to vector<2x256xf32>
    %c0_i32_10 = arith.constant 0 : i32
    %17 = vector.broadcast %c0_i32_10 : i32 to vector<2x256xi32>
    %18 = arith.cmpi eq, %15, %17 : vector<2x256xi32>
    %19 = vector.extract_strided_slice %13 {offsets = [0, 0, 0], sizes = [2, 1, 256], strides = [1, 1, 1]} : vector<2x4x256xf32> to vector<2x1x256xf32>
    %20 = vector.shape_cast %19 : vector<2x1x256xf32> to vector<2x256xf32>
    %cst_11 = arith.constant 0.000000e+00 : f32
    %21 = vector.broadcast %cst_11 : f32 to vector<2x256xf32>
    %22 = arith.select %18, %20, %21 : vector<2x256xi1>, vector<2x256xf32>
    %23 = arith.addf %16, %22 : vector<2x256xf32>
    %c1_i32 = arith.constant 1 : i32
    %24 = vector.broadcast %c1_i32 : i32 to vector<2x256xi32>
    %25 = arith.cmpi eq, %15, %24 : vector<2x256xi32>
    %26 = vector.extract_strided_slice %13 {offsets = [0, 1, 0], sizes = [2, 1, 256], strides = [1, 1, 1]} : vector<2x4x256xf32> to vector<2x1x256xf32>
    %27 = vector.shape_cast %26 : vector<2x1x256xf32> to vector<2x256xf32>
    %cst_12 = arith.constant 0.000000e+00 : f32
    %28 = vector.broadcast %cst_12 : f32 to vector<2x256xf32>
    %29 = arith.select %25, %27, %28 : vector<2x256xi1>, vector<2x256xf32>
    %30 = arith.addf %23, %29 : vector<2x256xf32>
    %c2_i32 = arith.constant 2 : i32
    %31 = vector.broadcast %c2_i32 : i32 to vector<2x256xi32>
    %32 = arith.cmpi eq, %15, %31 : vector<2x256xi32>
    %33 = vector.extract_strided_slice %13 {offsets = [0, 2, 0], sizes = [2, 1, 256], strides = [1, 1, 1]} : vector<2x4x256xf32> to vector<2x1x256xf32>
    %34 = vector.shape_cast %33 : vector<2x1x256xf32> to vector<2x256xf32>
    %cst_13 = arith.constant 0.000000e+00 : f32
    %35 = vector.broadcast %cst_13 : f32 to vector<2x256xf32>
    %36 = arith.select %32, %34, %35 : vector<2x256xi1>, vector<2x256xf32>
    %37 = arith.addf %30, %36 : vector<2x256xf32>
    %c3_i32 = arith.constant 3 : i32
    %38 = vector.broadcast %c3_i32 : i32 to vector<2x256xi32>
    %39 = arith.cmpi eq, %15, %38 : vector<2x256xi32>
    %40 = vector.extract_strided_slice %13 {offsets = [0, 3, 0], sizes = [2, 1, 256], strides = [1, 1, 1]} : vector<2x4x256xf32> to vector<2x1x256xf32>
    %41 = vector.shape_cast %40 : vector<2x1x256xf32> to vector<2x256xf32>
    %cst_14 = arith.constant 0.000000e+00 : f32
    %42 = vector.broadcast %cst_14 : f32 to vector<2x256xf32>
    %43 = arith.select %39, %41, %42 : vector<2x256xi1>, vector<2x256xf32>
    %44 = arith.addf %37, %43 : vector<2x256xf32>
    %c0_15 = arith.constant 0 : index
    %c0_16 = arith.constant 0 : index
    %45 = vector.load %arg6[%c0_15, %c0_16] : memref<2x256xf32, #tpu.memory_space<vmem>>, vector<2x256xf32>
    %46 = arith.addf %45, %44 : vector<2x256xf32>
    %c0_17 = arith.constant 0 : index
    %c0_18 = arith.constant 0 : index
    %47 = vector.load %arg6[%c0_17, %c0_18] : memref<2x256xf32, #tpu.memory_space<vmem>>, vector<2x256xf32>
    tpu.vector_store %arg6[%c0_17, %c0_18], %46 {strides = array<i32>} : memref<2x256xf32, #tpu.memory_space<vmem>>, vector<2x256xf32>,
    %c0_19 = arith.constant 0 : index
    %c0_20 = arith.constant 0 : index
    %48 = vector.load %arg7[%c0_19, %c0_20] : memref<2x256xf32, #tpu.memory_space<vmem>>, vector<2x256xf32>
    %c-1_i32 = arith.constant -1 : i32
    %49 = vector.broadcast %c-1_i32 : i32 to vector<2x256xi32>
    %50 = arith.cmpi ne, %15, %49 : vector<2x256xi32>
    %51 = arith.extui %50 : vector<2x256xi1> to vector<2x256xi32>
    %52 = arith.sitofp %51 : vector<2x256xi32> to vector<2x256xf32>
    %53 = arith.addf %48, %52 : vector<2x256xf32>
    %c0_21 = arith.constant 0 : index
    %c0_22 = arith.constant 0 : index
    %54 = vector.load %arg7[%c0_21, %c0_22] : memref<2x256xf32, #tpu.memory_space<vmem>>, vector<2x256xf32>
    tpu.vector_store %arg7[%c0_21, %c0_22], %53 {strides = array<i32>} : memref<2x256xf32, #tpu.memory_space<vmem>>, vector<2x256xf32>,
    %c8_i32 = arith.constant 8 : i32
    %55 = arith.cmpi eq, %arg1, %c8_i32 : i32
    %56 = arith.extui %55 : i1 to i32
    %c0_i32_23 = arith.constant 0 : i32
    %57 = arith.cmpi ne, %56, %c0_i32_23 : i32
    scf.if %57 {
      %c0_24 = arith.constant 0 : index
      %c0_25 = arith.constant 0 : index
      %58 = vector.load %arg6[%c0_24, %c0_25] : memref<2x256xf32, #tpu.memory_space<vmem>>, vector<2x256xf32>
      %59 = vector.shape_cast %58 : vector<2x256xf32> to vector<1x2x256xf32>
      %cst_26 = arith.constant dense<0.000000e+00> : vector<1xf32>
      %60 = vector.multi_reduction <add>, %59, %cst_26 [1, 2] : vector<1x2x256xf32> to vector<1xf32>
      %61 = vector.shape_cast %60 : vector<1xf32> to vector<1x1x1xf32>
      %62 = vector.extract %61[0, 0, 0] : f32 from vector<1x1x1xf32>
      %63 = vector.broadcast %62 : f32 to vector<8x128xf32>
      %c0_27 = arith.constant 0 : index
      %c0_28 = arith.constant 0 : index
      %c0_29 = arith.constant 0 : index
      %c0_30 = arith.constant 0 : index
      %64 = vector.load %arg5[%c0_27, %c0_28, %c0_29, %c0_30] : memref<1x2x8x128xf32, #tpu.memory_space<vmem>>, vector<1x1x8x128xf32>
      %65 = vector.shape_cast %64 : vector<1x1x8x128xf32> to vector<8x128xf32>
      %66 = vector.shape_cast %63 : vector<8x128xf32> to vector<1x1x8x128xf32>
      tpu.vector_store %arg5[%c0_27, %c0_28, %c0_29, %c0_30], %66 {strides = array<i32>} : memref<1x2x8x128xf32, #tpu.memory_space<vmem>>, vector<1x1x8x128xf32>,
      %c0_31 = arith.constant 0 : index
      %c0_32 = arith.constant 0 : index
      %67 = vector.load %arg7[%c0_31, %c0_32] : memref<2x256xf32, #tpu.memory_space<vmem>>, vector<2x256xf32>
      %68 = vector.shape_cast %67 : vector<2x256xf32> to vector<1x2x256xf32>
      %cst_33 = arith.constant dense<0.000000e+00> : vector<1xf32>
      %69 = vector.multi_reduction <add>, %68, %cst_33 [1, 2] : vector<1x2x256xf32> to vector<1xf32>
      %70 = vector.shape_cast %69 : vector<1xf32> to vector<1x1x1xf32>
      %71 = vector.extract %70[0, 0, 0] : f32 from vector<1x1x1xf32>
      %72 = vector.broadcast %71 : f32 to vector<8x128xf32>
      %c0_34 = arith.constant 0 : index
      %c1 = arith.constant 1 : index
      %c0_35 = arith.constant 0 : index
      %c0_36 = arith.constant 0 : index
      %73 = vector.load %arg5[%c0_34, %c1, %c0_35, %c0_36] : memref<1x2x8x128xf32, #tpu.memory_space<vmem>>, vector<1x1x8x128xf32>
      %74 = vector.shape_cast %73 : vector<1x1x8x128xf32> to vector<8x128xf32>
      %75 = vector.shape_cast %72 : vector<8x128xf32> to vector<1x1x8x128xf32>
      tpu.vector_store %arg5[%c0_34, %c1, %c0_35, %c0_36], %75 {strides = array<i32>} : memref<1x2x8x128xf32, #tpu.memory_space<vmem>>, vector<1x1x8x128xf32>,
    } else {
    }
    return
  }
  func.func @transform_0(%arg0: i32, %arg1: i32) -> (i32, i32, i32) {
    %c9_i32 = arith.constant 9 : i32
    %0 = arith.muli %arg0, %c9_i32 : i32
    %1 = arith.addi %0, %arg1 : i32
    %c0_i32 = arith.constant 0 : i32
    %c0_i32_0 = arith.constant 0 : i32
    %c0_i32_1 = arith.constant 0 : i32
    return %c0_i32, %c0_i32_0, %1 : i32, i32, i32
  }
  func.func @transform_1(%arg0: i32, %arg1: i32) -> (i32, i32) {
    %c9_i32 = arith.constant 9 : i32
    %0 = arith.muli %arg0, %c9_i32 : i32
    %1 = arith.addi %0, %arg1 : i32
    %c0_i32 = arith.constant 0 : i32
    %c0_i32_0 = arith.constant 0 : i32
    return %c0_i32, %1 : i32, i32
  }
  func.func @transform_2(%arg0: i32, %arg1: i32) -> (i32, i32, i32) {
    %c9_i32 = arith.constant 9 : i32
    %0 = arith.muli %arg0, %c9_i32 : i32
    %1 = arith.addi %0, %arg1 : i32
    %c0_i32 = arith.constant 0 : i32
    %c0_i32_0 = arith.constant 0 : i32
    %c0_i32_1 = arith.constant 0 : i32
    return %c0_i32, %c0_i32_0, %1 : i32, i32, i32
  }
  func.func @transform_3(%arg0: i32, %arg1: i32) -> (i32, i32, i32, i32) {
    %c0_i32 = arith.constant 0 : i32
    %c0_i32_0 = arith.constant 0 : i32
    %c0_i32_1 = arith.constant 0 : i32
    %c0_i32_2 = arith.constant 0 : i32
    return %arg0, %c0_i32, %c0_i32_0, %c0_i32_1 : i32, i32, i32, i32
  }
}

</mosaic_0001>

<bundles_post_ra>
// kernel: tpu_custom_call.1
= control target key start
LH: loop header
LB: loop body
LE: loop exit
PB: predicated region body
PF: predicated region fallthrough
CT: control target
= control target key end

     0   :  { %s1478_s0 = inlined_call_operand.hbm [shape: f32[2,4,4608], index: 0, kind: input, shape index: {}]   ;;  %s1479_s1 = inlined_call_operand.hbm [shape: s32[2,4608], index: 1, kind: input, shape index: {}]   ;;  %s1480_s2 = inlined_call_operand.hbm [shape: f32[2,4,4608], index: 2, kind: output, shape index: {0}]   ;;  %s1481_s3 = inlined_call_operand.hbm [shape: f32[2,2,8,128], index: 3, kind: output, shape index: {1}]  }
   0x1   :  { %1491 = sst [smem:[#allocation27_spill]] %s1478_s0 }
   0x2   :  { %9 = vsyncpa [#allocation5], 0 }
   0x3   :  { %11 = vsyncpa [#allocation5 + $0x1], 0 }
   0x4   :  { %12 = vsyncpa [#allocation8], 0 }
   0x5   :  { %14 = vsyncpa [#allocation8 + $0x1], 0 }
   0x6   :  { %15 = vsyncpa [#allocation6], 0 }
   0x7   :  { %17 = vsyncpa [#allocation6 + $0x1], 0 }
   0x8   :  { %18 = vsyncpa [#allocation11], 0 }
   0x9   :  { %20 = vsyncpa [#allocation11 + $0x1], 0  ;;  %s1121_s12 = smov 0   ;;  %s1123_s13 = smov 0  }
   0xa   :  { %s1125_s14 = smov 0   ;;  %s1127_s15 = smov 0  }
   0xb   :  { %s1129_s16 = smov 0   ;;  %s1131_s17 = smov 0  }
   0xc   :  { %s1133_s18 = smov 0   ;;  %s1135_s19 = smov 0  }
   0xd   :  { %s1137_s20 = smov 0   ;;  %s1139_s21 = smov 0  }
   0xe   :  { %s1141_s22 = smov 0  }
   0xf LB: > { %1492 = sst [smem:[#allocation16_spill]] %s1046_s12  ;;  %s704_s23 = sadd.s32 4294967295, %s1086_s22   ;;  %s1086_s22 = sphi %s1141_s22, %s26_s22   ;;  %s1082_s21 = sphi %s1139_s21, %s1525_s21   ;;  %s1078_s20 = sphi %s1137_s20, %s1524_s20   ;;  %s1074_s19 = sphi %s1135_s19, %s1523_s19   ;;  %s1070_s18 = sphi %s1133_s18, %s1522_s18   ;;  %s1066_s17 = sphi %s1131_s17, %s1521_s17   ;;  %s1062_s16 = sphi %s1129_s16, %s1529_s16   ;;  %s1058_s15 = sphi %s1127_s15, %s1528_s15   ;;  %s1054_s14 = sphi %s1125_s14, %s1519_s14   ;;  %s1050_s13 = sphi %s1123_s13, %s1527_s13   ;;  %s1046_s12 = sphi %s1121_s12, %s1526_s12  }
  0x10   : > { %1493 = sst [smem:[#allocation17_spill]] %s1054_s14  ;;  %s705_s24 = sadd.s32 4294967294, %s1086_s22  }
  0x11   : > { %1494 = sst [smem:[#allocation18_spill]] %s1066_s17  ;;  %s35_s25 = sadd.s32 1, %s1078_s20 }
  0x12   : > { %1495 = sst [smem:[#allocation19_spill]] %s1078_s20  ;;  %s38_s26 = sadd.s32 1, %s1082_s21 }
  0x13   : > { %1496 = sst [smem:[#allocation20_spill]] %s1082_s21  ;;  %p36_p0 = scmp.ge.s32.totalorder %s35_s25, 9 }
  0x14   : > { %s42_s27 = smul.u32 9, %s1082_s21  ;;  %s49_s28 = sadd.s32 1, %s1066_s17 }
  0x15   : > { %p56_p1 = scmp.ne.s32.totalorder %s1066_s17, %s1062_s16  ;;  %s1531_s25 = smov (%p36_p0, %s35_s25), 0 }
  0x16   : > { %1497 = sst [smem:[#allocation21_spill]] %s1531_s25  ;;  %s1533_s26 = smov (!%p36_p0, %s38_s26), %s1082_s21 }
  0x17   : > { %s1188_s29 = sadd.s32 %s1078_s20, %s42_s27  ;;  %p57_p2 = scmp.eq.s32.totalorder %s1086_s22, 0 }
  0x18   : > { %p40_p3 = scmp.ge.s32.totalorder %s1533_s26, 2  ;;  %p62_p4 = scmp.ne.s32.totalorder %s1062_s16, %s1058_s15 }
  0x19   : > { %p1196_p5 = por %p57_p2, %p56_p1  ;;  %p63_p6 = scmp.eq.s32.totalorder %s704_s23, 0 }
  0x1a   : > { %s1535_s26 = smov (%p40_p3, %s1533_s26), 0  ;;  %p1206_p8 = scmp.eq.s32.totalorder %s704_s23, 17 }
  0x1b   : > { %1499 = sst [smem:[#allocation22_spill]] %s1535_s26  ;;  %p1202_p7 = por %p63_p6, %p62_p4 }
  0x1c   : > { %s44_s6 = smul.u32 9, %s1535_s26  ;;  %p1211_p9 = scmp.eq.s32.totalorder %s705_s24, 17 }
  0x1d   : > { %p1220_p10 = por %p1206_p8, %p56_p1  ;;  %s132_s9 = ssub.s32 %s1082_s21, %s1535_s26 }
  0x1e   : > { %s45_s10 = sadd.s32 %s44_s6, %s1531_s25  ;;  %p1229_p11 = por %p1211_p9, %p62_p4 }
  0x1f   : > { %s46_s23 = ssub.s32 %s1188_s29, %s45_s10  ;;  %p133_p12 = scmp.eq.s32.totalorder %s132_s9, 0 }
  0x20   : > { %s1504_s11 = scalar_select %p1229_p11, 1, 0 }
  0x21   : > { %p47_p13 = scmp.eq.s32.totalorder %s46_s23, 0  ;;  %s135_s24 = sadd.s32 1, %s1054_s14 }
  0x22   : > { %1505 = sst [smem:[#allocation23_spill]] %s1504_s11  ;;  %p145_p0 = scmp.ne.s32.totalorder %s1054_s14, %s1050_s13 }
  0x23   : > { %s1236_s27 = scalar_select %p133_p12, %s1054_s14, %s135_s24  }
  0x24   : > { %s1239_s20 = scalar_select %p47_p13, %s1066_s17, %s49_s28  }
  0x25   : > { %1506 = sst [smem:[#allocation24_spill]] %s1236_s27  ;;  %p151_p1 = scmp.ne.s32.totalorder %s1050_s13, %s1046_s12 }
  0x26   : > { %1507 = sst [smem:[#allocation25_spill]] %s1239_s20  ;;  %p763_p2 = scmp.lt.s32.totalorder %s1086_s22, 18 }
  0x27   : > { %p1248_p3 = por %p145_p0, %p1206_p8  ;;  %p1254_p4 = por %p151_p1, %p1211_p9 }
  0x28   : > { %s1259_s9 = sand.u32 1, %s1066_s17   ;;  %s733_s23 = sshll.u32 %s1188_s29, 7 }
  0x29   : > { %s1509_s10 = scalar_select %p1254_p4, 1, 0 }
  0x2a   : > { %s708_s28 = sshll.u32 %s1259_s9, 4  ;;  %s1511_s0 = sld [smem:[#allocation27_spill]] }
  0x2b   : > { %1510 = sst [smem:[#allocation26_spill]] %s1509_s10  ;;  %s176_s5 = scalar_lea.vmem [#allocation4], %s708_s28 }
  0x2c   : > { %s185_s21 = sshll.u32 %s176_s5, 4  ;;  %p1268_p6 = pnand %p763_p2, %p1196_p5  ;;  %s186_s21 = int_to_ptr.vmem [resolvable:$true] %s185_s21 }
  0x2d   : > { %p714_p8 = scmp.ge.s32.totalorder %s1086_s22, 1  ;;  %s173_s7 = scalar_lea.sflag [#allocation5], %s1259_s9 }
  0x2e   : > { %p878_p9 = pneg %p1268_p6  ;;  %s889_s17 = scalar_lea.vmem %s186_s21, 256 }
  0x2f   : > { %p890_p12 = scmp.ne.s32.totalorder %s186_s21, %s889_s17  ;;  %s1088_s26 = smov [#allocation4]  }
  0x30   : > { %s184_s25 = scalar_lea.hbm %s1511_s0, %s733_s23  ;;  %s894_s23 = sshll.u32 %s1088_s26, 4  ;;  %s895_s23 = int_to_ptr.vmem [resolvable:$false] %s894_s23 }
  0x31   : > { %p892_p13 = pnand %p890_p12, %p878_p9  ;;  %s896_s30 = scalar_lea.vmem %s895_s23, 512 }
  0x32   : > { %p897_p5 = scmp.lt.s32.totalorder %s186_s21, %s895_s23  ;;  %p898_p1 = scmp.lt.s32.totalorder %s896_s30, %s889_s17 }
  0x33   : > { %p893_p0 = pneg %p892_p13 }
  0x34   : > { %p899_p2 = por %p898_p1, %p897_p5 }
  0x36   : > { %p900_p4 = pnand %p899_p2, %p893_p0 }
  0x38   : > { %903 = shalt.err (!%p900_p4)
}
  0x39   : > { %s1089_s28 = smov 2304   ;;  %s1090_s24 = smov 128  }
  0x3a   : > { %s1091_s5 = smov 8   ;;  %p214_p12 = scmp.lt.s32.totalorder %s1086_s22, 19 }
  0x3b   : > { %752 = dma.hbm_to_vmem [thread:$0]  (!%p1268_p6), %s184_s25, 256, %s186_s21, %s173_s7, %s1089_s28, %s1090_s24, %s1091_s5  }
  0x3c   : > { %s711_s26 = sshll.u32 %s1259_s9, 2  ;;  %s734_s0 = sshll.u32 %s1188_s29, 6 }
  0x3d   : > { %p1286_p13 = pnand %p714_p8, %p214_p12  ;;  %s207_s27 = scalar_lea.hbm %s1479_s1, %s734_s0 }
  0x3e   : > { %s199_s14 = scalar_lea.vmem [#allocation7], %s711_s26  ;;  %s196_s12 = scalar_lea.sflag [#allocation8], %s1259_s9 }
  0x3f   : > { %s209_s10 = sshll.u32 %s199_s14, 4  ;;  %s1092_s21 = smov [#allocation7]   ;;  %s210_s10 = int_to_ptr.vmem [resolvable:$true] %s209_s10 }
  0x40   : > { %s917_s11 = scalar_lea.vmem %s210_s10, 64  ;;  %s922_s25 = sshll.u32 %s1092_s21, 4  ;;  %s923_s25 = int_to_ptr.vmem [resolvable:$false] %s922_s25 }
  0x41   : > { %p918_p4 = scmp.ne.s32.totalorder %s210_s10, %s917_s11  ;;  %s924_s29 = scalar_lea.vmem %s923_s25, 128 }
  0x42   : > { %p925_p8 = scmp.lt.s32.totalorder %s210_s10, %s923_s25  ;;  %p926_p1 = scmp.lt.s32.totalorder %s924_s29, %s917_s11 }
  0x43   : > { %p920_p0 = pnand %p918_p4, %p878_p9 }
  0x44   : > { %p927_p2 = por %p926_p1, %p925_p8 }
  0x45   : > { %p921_p5 = pneg %p920_p0 }
  0x47   : > { %p928_p12 = pnand %p927_p2, %p921_p5 }
  0x49   : > { %931 = shalt.err (!%p928_p12)
}
  0x4a   : > { %755 = dma.hbm_to_vmem [thread:$0]  (!%p1268_p6), %s207_s27, 64, %s210_s10, %s196_s12  }
  0x4b   : > { %218 = sbr.rel (%p1286_p13) target bundleno = 452 (0x1c4), region = 28  ;;  %s1302_s0 = sand.u32 (!%p1286_p13), 1, %s1062_s16  }
  0x4c   : > { %s715_s14 = sshll.u32 (!%p1286_p13), %s1302_s0, 4  ;;  %s221_s9 = scalar_lea.sflag (!%p1286_p13), [#allocation5], %s1302_s0 }
  0x4d   : > { %s224_s7 = scalar_lea.vmem (!%p1286_p13), [#allocation4], %s715_s14 }
  0x50   : > { %1029 = dma.done.wait (%p1202_p7), %s221_s9, 256  }
  0x51   : > { %1031 = vsyncadd (%p1202_p7), %s221_s9, 4294967040  ;;  %s716_s12 = sshll.u32 %s1302_s0, 2  ;;  %s230_s20 = scalar_lea.sflag [#allocation8], %s1302_s0 }
  0x52   : > { %s1312_s11 = scalar_lea.vmem [#allocation7], %s716_s12 }
  0x53   : > { %1033 = dma.done.wait (%p1202_p7), %s230_s20, 64  }
  0x54   : > { %1035 = vsyncadd (%p1202_p7), %s230_s20, 4294967232  ;;  %s263_s27 = sand.u32 1, %s1050_s13   ;;  %s1321_s28 = scalar_lea.vmem [#allocation9], %s715_s14 }
  0x55   : > { %s718_s10 = sshll.u32 %s263_s27, 4  ;;  %p719_p6 = scmp.ne.s32.totalorder %s1070_s18, 0 }
  0x56   : > { %s1323_s24 = scalar_lea.vmem [#allocation10], %s718_s10 }
  0x57   : > { %278 = sbr.rel (%p719_p6) target bundleno = 94 (0x5e), region = 40 }
  0x5c   : > { %v1093_v0 = vmov 0.0  }
  0x5d   : > { %279 = vst [vmem:[#allocation2] sm:$0xf] %v1093_v0  ;;  %280 = vst [vmem:[#allocation3] sm:$0xf] %v1093_v0 }
  0x5e PF: > { %v281_v1 = vld [vmem:[%s224_s7] sm:$0xff]  ;;  %vm289_vm0 = vcmask 1043456   ;;  %v282_v2 = vld [vmem:[%s224_s7 + $0x8] sm:$0xff]  ;;  %v1094_v25 = vmov 0.0   ;;  %vm409_vm2 = vcmask 1041409   ;;  %vm411_vm3 = vcmask 1043459  }
  0x5f   : > { %v285_v3 = vcombine.high %v281_v1, %v281_v1  ;;  %v290_v4 = vsel %vm289_vm0, %v281_v1, -inf  ;;  %v286_v5 = vcombine.high %v282_v2, %v282_v2  ;;  %v304_v7 = vsel %vm289_vm0, %v282_v2, -inf  ;;  %v1331_v18 = vld [vmem:[%s1312_s11] sm:$0xf]  ;;  %p721_p7 = scmp.ne.s32.totalorder %s1070_s18, 8 }
  0x60   : > { %v291_v6 = vrot.slane %v290_v4, 4  ;;  %v305_v9 = vrot.slane %v304_v7, 4  ;;  %vm459_vm1 = vcmp.ne.s32.totalorder %v1331_v18, 4294967295  ;;  %vm387_vm4 = vcmp.eq.s32.totalorder %v1331_v18, 0 }
  0x61   : > { %v297_v8 = vsel %vm289_vm0, %v285_v3, -inf  ;;  %v311_v10 = vsel %vm289_vm0, %v286_v5, -inf  ;;  %v720_v26 = vsel %vm459_vm1, 1.0, %v1094_v25  ;;  %vm413_vm5 = vcmask 1045509  }
  0x62   : > { %v292_v11 = vmax.f32 %v290_v4, %v291_v6  ;;  %v298_v12 = vrot.slane %v297_v8, 4  ;;  %v312_v13 = vrot.slane %v311_v10, 4  ;;  %v306_v14 = vmax.f32 %v304_v7, %v305_v9 }
  0x63   : > { %vm415_vm6 = vcmask 1047559   ;;  %vm420_vm7 = vcmp.eq.s32.totalorder %v1331_v18, 1  ;;  %vm431_vm8 = vcmp.eq.s32.totalorder %v1331_v18, 2  ;;  %vm444_vm9 = vcmp.eq.s32.totalorder %v1331_v18, 3 }
  0x64   : > { %v293_v15 = vrot.slane %v292_v11, 2  ;;  %v299_v16 = vmax.f32 %v297_v8, %v298_v12  ;;  %v313_v17 = vmax.f32 %v311_v10, %v312_v13  ;;  %v307_v19 = vrot.slane %v306_v14, 2  ;;  %v458_v20 = vld [vmem:[#allocation3] sm:$0xf] }
  0x65   : > { %v462_v30 = vadd.f32 %v720_v26, %v458_v20  ;;  %v1095_v12 = vmov 1983009808  }
  0x66   : > { %v294_v21 = vmax.f32 %v292_v11, %v293_v15  ;;  %v300_v22 = vrot.slane %v299_v16, 2  ;;  %v314_v23 = vrot.slane %v313_v17, 2  ;;  %v308_v24 = vmax.f32 %v306_v14, %v307_v19 }
  0x67   : > { %463 = vst [vmem:[#allocation3] sm:$0xf] %v462_v30  ;;  %v391_v13 = vunpack.c.l.s4 %v1095_v12  ;;  %v393_v14 = vlaneseq }
  0x68   : > { %v295_v27 = vrot.slane %v294_v21, 1  ;;  %v301_v28 = vmax.f32 %v299_v16, %v300_v22  ;;  %v315_v29 = vmax.f32 %v313_v17, %v314_v23  ;;  %v309_v31 = vrot.slane %v308_v24, 1 }
  0x69   : > { %v392_v19 = vunpack.c.0.s8 %v391_v13  ;;  %v394_v20 = vshrl.u32 %v393_v14, 7 }
  0x6a   : > { %v296_v32 = vmax.f32 %v294_v21, %v295_v27  ;;  %v302_v33 = vrot.slane %v301_v28, 1  ;;  %v316_v34 = vrot.slane %v315_v29, 1  ;;  %v310_v35 = vmax.f32 %v308_v24, %v309_v31 }
  0x6b   : > { %v395_v27 = vsub.s32 %v392_v19, %v394_v20 }
  0x6c   : > { %v303_v36 = vmax.f32 %v301_v28, %v302_v33  ;;  %v317_v37 = vmax.f32 %v315_v29, %v316_v34 }
  0x6e   : > { %v322_v38 = vcombine.low %v296_v32, %v303_v36  ;;  %v323_v39 = vcombine.low %v310_v35, %v317_v37 }
  0x70   : > { %v326_v40 = vsub.f32 %v281_v1, %v322_v38  ;;  %v327_v41 = vsub.f32 %v282_v2, %v323_v39 }
  0x72   : > { %v328_v42 = vmul.f32 1.442695, %v326_v40  ;;  %v330_v43 = vmul.f32 1.442695, %v327_v41 }
  0x74   : > { %864 = vpow2.f32 %v328_v42 }
  0x75   : > { %866 = vpow2.f32 %v330_v43 }
  0x81   : > { %v865_v44 = vpop.eup %864 }
  0x82   : > { %v867_v45 = vpop.eup %866  ;;  %v334_v46 = vcombine.high %v865_v44, %v865_v44  ;;  %v338_v47 = vsel %vm289_vm0, %v865_v44, 0.0 }
  0x83   : > { %v339_v48 = vrot.slane %v338_v47, 4  ;;  %v335_v49 = vcombine.high %v867_v45, %v867_v45  ;;  %v352_v50 = vsel %vm289_vm0, %v867_v45, 0.0 }
  0x84   : > { %v345_v51 = vsel %vm289_vm0, %v334_v46, 0.0  ;;  %v353_v52 = vrot.slane %v352_v50, 4 }
  0x85   : > { %v340_v53 = vadd.f32 %v339_v48, %v338_v47  ;;  %v346_v54 = vrot.slane %v345_v51, 4  ;;  %v359_v55 = vsel %vm289_vm0, %v335_v49, 0.0 }
  0x86   : > { %v354_v56 = vadd.f32 %v353_v52, %v352_v50  ;;  %v360_v57 = vrot.slane %v359_v55, 4 }
  0x87   : > { %v341_v58 = vrot.slane %v340_v53, 2  ;;  %v347_v59 = vadd.f32 %v346_v54, %v345_v51 }
  0x88   : > { %v355_v60 = vrot.slane %v354_v56, 2  ;;  %v361_v61 = vadd.f32 %v360_v57, %v359_v55 }
  0x89   : > { %v342_v62 = vadd.f32 %v341_v58, %v340_v53  ;;  %v348_v63 = vrot.slane %v347_v59, 2 }
  0x8a   : > { %v356_v0 = vadd.f32 %v355_v60, %v354_v56  ;;  %v362_v1 = vrot.slane %v361_v61, 2 }
  0x8b   : > { %v343_v2 = vrot.slane %v342_v62, 1  ;;  %v349_v3 = vadd.f32 %v348_v63, %v347_v59 }
  0x8c   : > { %v357_v4 = vrot.slane %v356_v0, 1  ;;  %v363_v5 = vadd.f32 %v362_v1, %v361_v61  ;;  %v455_v61 = vld [vmem:[#allocation2] sm:$0xf] }
  0x8d   : > { %v344_v6 = vadd.f32 %v343_v2, %v342_v62  ;;  %v350_v7 = vrot.slane %v349_v3, 1 }
  0x8e   : > { %v358_v8 = vadd.f32 %v357_v4, %v356_v0  ;;  %v364_v9 = vrot.slane %v363_v5, 1 }
  0x8f   : > { %v351_v10 = vadd.f32 %v350_v7, %v349_v3  ;;  %868 = vlog2.f32 %v344_v6 }
  0x90   : > { %v365_v11 = vadd.f32 %v364_v9, %v363_v5  ;;  %870 = vlog2.f32 %v358_v8 }
  0x91   : > { %872 = vlog2.f32 %v351_v10 }
  0x92   : > { %874 = vlog2.f32 %v365_v11 }
  0x9c   : > { %v869_v15 = vpop.eup %868 }
  0x9d   : > { %v871_v16 = vpop.eup %870  ;;  %v367_v17 = vmul.f32 0.6931472, %v869_v15 }
  0x9e   : > { %v873_v21 = vpop.eup %872  ;;  %v371_v22 = vmul.f32 0.6931472, %v871_v16 }
  0x9f   : > { %v875_v23 = vpop.eup %874  ;;  %v369_v24 = vmul.f32 0.6931472, %v873_v21 }
  0xa0   : > { %v373_v25 = vmul.f32 0.6931472, %v875_v23 }
  0xa1   : > { %v378_v26 = vcombine.low %v367_v17, %v369_v24 }
  0xa2   : > { %v379_v28 = vcombine.low %v371_v22, %v373_v25 }
  0xa3   : > { %v382_v29 = vsub.f32 %v326_v40, %v378_v26 }
  0xa4   : > { %v383_v30 = vsub.f32 %v327_v41, %v379_v28 }
  0xa5   : > { %384 = vst [vmem:[%s1321_s28] sm:$0xff] %v382_v29  ;;  %v396_v31 = vrot.slane %v382_v29, %v395_v27 }
  0xa6   : > { %385 = vst [vmem:[%s1321_s28 + $0x8] sm:$0xff] %v383_v30  ;;  %v403_v32 = vrot.slane %v383_v30, %v395_v27 }
  0xa7   : > { %v421_v33 = vrot.slane %v396_v31, 1  ;;  %v432_v34 = vcombine.high %v396_v31, %v396_v31 }
  0xa8   : > { %v408_v35 = vrot.slane %v403_v32, 7  ;;  %v433_v36 = vcombine.high %v403_v32, %v403_v32 }
  0xa9   : > { %v445_v37 = vrot.slane %v432_v34, 1  ;;  %v424_v38 = vsel %vm409_vm2, %v403_v32, %v421_v33 }
  0xaa   : > { %v410_v39 = vsel %vm409_vm2, %v408_v35, %v396_v31  ;;  %v425_v40 = vsel %vm411_vm3, %v403_v32, %v424_v38  ;;  %v436_v41 = vrot.slane %v433_v36, 7 }
  0xab   : > { %v412_v42 = vsel %vm411_vm3, %v408_v35, %v410_v39  ;;  %v426_v43 = vsel %vm413_vm5, %v403_v32, %v425_v40  ;;  %v448_v44 = vsel %vm409_vm2, %v433_v36, %v445_v37 }
  0xac   : > { %v414_v45 = vsel %vm413_vm5, %v408_v35, %v412_v42  ;;  %v427_v46 = vsel %vm415_vm6, %v403_v32, %v426_v43  ;;  %v437_v47 = vsel %vm409_vm2, %v436_v41, %v432_v34  ;;  %v449_v48 = vsel %vm411_vm3, %v433_v36, %v448_v44 }
  0xad   : > { %v416_v49 = vsel %vm415_vm6, %v408_v35, %v414_v45  ;;  %v429_v50 = vsel %vm420_vm7, %v427_v46, 0.0  ;;  %v438_v51 = vsel %vm411_vm3, %v436_v41, %v437_v47  ;;  %v450_v52 = vsel %vm413_vm5, %v433_v36, %v449_v48 }
  0xae   : > { %v418_v53 = vsel %vm387_vm4, %v416_v49, 0.0  ;;  %v439_v54 = vsel %vm413_vm5, %v436_v41, %v438_v51  ;;  %v451_v55 = vsel %vm415_vm6, %v433_v36, %v450_v52 }
  0xaf   : > { %v430_v56 = vadd.f32 %v429_v50, %v418_v53  ;;  %v440_v57 = vsel %vm415_vm6, %v436_v41, %v439_v54  ;;  %v453_v59 = vsel %vm444_vm9, %v451_v55, 0.0 }
  0xb0   : > { %v442_v58 = vsel %vm431_vm8, %v440_v57, 0.0 }
  0xb1   : > { %v443_v60 = vadd.f32 %v442_v58, %v430_v56 }
  0xb3   : > { %v454_v62 = vadd.f32 %v453_v59, %v443_v60  ;;  %467 = sbr.rel (%p721_p7) target bundleno = 402 (0x192), region = 44 }
  0xb5   : > { %v456_v63 = vadd.f32 %v455_v61, %v454_v62 }
  0xb7   : > { %457 = vst [vmem:[#allocation2] sm:$0xf] %v456_v63 }
  0xb8   : > { %vm480_vm10 = vcmask 1041408   ;;  %v723_v3 = vld.sshfl [vmem:[#allocation3] sm:$0x33 pattern:$0x76325410] }
  0xb9   : > { %v504_v4 = vcombine.high %v723_v3, %v723_v3  ;;  %v507_v6 = vsel %vm480_vm10, %v723_v3, 0.0 }
  0xbb   : > { %v508_v8 = vsel %vm480_vm10, %v504_v4, 0.0 }
  0xbc   : > { %v509_v18 = vadd.f32 %v508_v8, %v507_v6 }
  0xbe   : > { %v722_v0 = vld.sshfl [vmem:[#allocation2] sm:$0x33 pattern:$0x76325410] }
  0xbf   : > { %v477_v1 = vcombine.high %v722_v0, %v722_v0  ;;  %v481_v2 = vsel %vm480_vm10, %v722_v0, 0.0 }
  0xc1   : > { %v482_v5 = vsel %vm480_vm10, %v477_v1, 0.0 }
  0xc2   : > { %v483_v7 = vadd.f32 %v482_v5, %v481_v2 }
  0xc4   : > { %484 = vadd.xlane.f32.xlu0 %v483_v7 }
  0xc8   : > { %510 = vadd.xlane.f32.xlu0 %v509_v18 }
 0x14d   : > { %v485_v9 = vpop.xlane.xlu0 %484 }
 0x14e   : > { %v486_v10 = vrot.slane %v485_v9, 4 }
 0x150   : > { %v487_v11 = vadd.f32 %v486_v10, %v485_v9 }
 0x151   : > { %v511_v12 = vpop.xlane.xlu0 %510 }
 0x152   : > { %v488_v13 = vrot.slane %v487_v11, 2  ;;  %v512_v14 = vrot.slane %v511_v12, 4 }
 0x154   : > { %v513_v15 = vadd.f32 %v512_v14, %v511_v12  ;;  %v489_v16 = vadd.f32 %v488_v13, %v487_v11 }
 0x156   : > { %v514_v17 = vrot.slane %v513_v15, 2  ;;  %v490_v19 = vrot.slane %v489_v16, 1 }
 0x158   : > { %v515_v20 = vadd.f32 %v514_v17, %v513_v15  ;;  %v491_v21 = vadd.f32 %v490_v19, %v489_v16 }
 0x15a   : > { %737 = vpush %v491_v21  ;;  %v516_v22 = vrot.slane %v515_v20, 1 }
 0x15c   : > { %v517_v23 = vadd.f32 %v516_v22, %v515_v20 }
 0x15e   : > { %739 = vpush %v517_v23 }
 0x18b   : > { %s738_s4 = spop %737 }
 0x18c   : > { %v493_v24 = vstv %s738_s4 }
 0x18d   : > { %494 = vst [vmem:[%s1323_s24] sm:$0xff] %v493_v24 }
 0x18f   : > { %s740_s5 = spop %739 }
 0x190   : > { %v519_v25 = vstv %s740_s5 }
 0x191   : > { %724 = vst [vmem:[%s1323_s24 + $0x8] sm:$0xff] %v519_v25 }
 0x192 PF: > { %s535_s26 = smul.u32 9, %s1074_s19  ;;  %s543_s17 = sshll.u32 %s1321_s28, 4  ;;  %s1372_s17 = int_to_ptr.vmem [resolvable:$true] %s543_s17 }
 0x193   : > { %s523_s14 = scalar_lea.sflag [#allocation6], %s1302_s0  ;;  %s932_s9 = scalar_lea.vmem %s1372_s17, 256 }
 0x194   : > { %s536_s23 = sadd.s32 %s1070_s18, %s535_s26  ;;  %p933_p9 = scmp.ne.s32.totalorder %s1372_s17, %s932_s9 }
 0x195   : > { %s735_s30 = sshll.u32 %s536_s23, 7  ;;  %s1096_s7 = smov [#allocation9]  }
 0x196   : > { %s1377_s29 = scalar_lea.hbm %s1480_s2, %s735_s30  ;;  %p934_p13 = pnand %p933_p9, %p1220_p10 }
 0x197   : > { %s936_s12 = sshll.u32 %s1096_s7, 4  ;;  %s937_s12 = int_to_ptr.vmem [resolvable:$false] %s936_s12 }
 0x198   : > { %p935_p4 = pneg %p934_p13  ;;  %s938_s18 = scalar_lea.vmem %s937_s12, 512 }
 0x199   : > { %p939_p0 = scmp.lt.s32.totalorder %s1372_s17, %s937_s12  ;;  %p940_p5 = scmp.lt.s32.totalorder %s938_s18, %s932_s9 }
 0x19b   : > { %p941_p8 = por %p940_p5, %p939_p0 }
 0x19d   : > { %p942_p1 = pnand %p941_p8, %p935_p4 }
 0x19f   : > { %945 = shalt.err (!%p942_p1)
}
 0x1a0   : > { %s946_s20 = scalar_lea.hbm %s1377_s29, 256  ;;  %s950_s28 = scalar_lea.hbm %s1480_s2, 4608 }
 0x1a1   : > { %p947_p2 = scmp.ne.s32.totalorder %s1377_s29, %s946_s20  ;;  %p951_p7 = scmp.lt.s32.totalorder %s1377_s29, %s1480_s2 }
 0x1a2   : > { %p952_p9 = scmp.lt.s32.totalorder %s950_s28, %s946_s20 }
 0x1a3   : > { %p948_p12 = pnand %p947_p2, %p1220_p10 }
 0x1a4   : > { %p953_p13 = por %p952_p9, %p951_p7 }
 0x1a5   : > { %p949_p6 = pneg %p948_p12 }
 0x1a7   : > { %p954_p4 = pnand %p953_p13, %p949_p6 }
 0x1a9   : > { %957 = shalt.err (!%p954_p4)
}
 0x1aa   : > { %s1097_s26 = smov 128   ;;  %s1098_s23 = smov 2304  }
 0x1ab   : > { %s1099_s30 = smov 8   ;;  %s736_s21 = sshll.u32 %s1074_s19, 8 }
 0x1ac   : > { %745 = dma.vmem_to_hbm [thread:$0]  (%p1220_p10), %s1372_s17, 256, %s1377_s29, %s523_s14, %s1097_s26, %s1098_s23, %s1099_s30  }
 0x1ad   : > { %s1408_s7 = scalar_lea.hbm %s1481_s3, %s736_s21  ;;  %s559_s12 = sshll.u32 %s1323_s24, 4  ;;  %s1411_s12 = int_to_ptr.vmem [resolvable:$true] %s559_s12 }
 0x1ae   : > { %s528_s18 = scalar_lea.sflag [#allocation11], %s263_s27  ;;  %s958_s20 = scalar_lea.vmem %s1411_s12, 256 }
 0x1af   : > { %p959_p0 = scmp.ne.s32.totalorder %s1411_s12, %s958_s20  ;;  %s1100_s8 = smov [#allocation10]  }
 0x1b0   : > { %s962_s19 = sshll.u32 %s1100_s8, 4  ;;  %s963_s19 = int_to_ptr.vmem [resolvable:$false] %s962_s19 }
 0x1b1   : > { %p960_p5 = pnand %p959_p0, %p1248_p3  ;;  %s964_s0 = scalar_lea.vmem %s963_s19, 512 }
 0x1b2   : > { %p965_p10 = scmp.lt.s32.totalorder %s1411_s12, %s963_s19  ;;  %p966_p1 = scmp.lt.s32.totalorder %s964_s0, %s958_s20 }
 0x1b3   : > { %p961_p8 = pneg %p960_p5 }
 0x1b4   : > { %p967_p2 = por %p966_p1, %p965_p10 }
 0x1b6   : > { %p968_p12 = pnand %p967_p2, %p961_p8 }
 0x1b8   : > { %971 = shalt.err (!%p968_p12)
}
 0x1b9   : > { %s972_s24 = scalar_lea.hbm %s1408_s7, 256  ;;  %s976_s29 = scalar_lea.hbm %s1481_s3, 512 }
 0x1ba   : > { %p973_p6 = scmp.ne.s32.totalorder %s1408_s7, %s972_s24  ;;  %p977_p13 = scmp.lt.s32.totalorder %s1408_s7, %s1481_s3 }
 0x1bb   : > { %p978_p4 = scmp.lt.s32.totalorder %s976_s29, %s972_s24 }
 0x1bc   : > { %p974_p7 = pnand %p973_p6, %p1248_p3 }
 0x1bd   : > { %p979_p0 = por %p978_p4, %p977_p13 }
 0x1be   : > { %p975_p9 = pneg %p974_p7 }
 0x1c0   : > { %p980_p5 = pnand %p979_p0, %p975_p9 }
 0x1c2   : > { %983 = shalt.err (!%p980_p5)
}
 0x1c3   : > { %746 = dma.vmem_to_hbm [thread:$0]  (%p1248_p3), %s1411_s12, 256, %s1408_s7, %s528_s18, %s1097_s26, %s1097_s26, %s1099_s30  }
 0x1c4 PF: > { %p764_p8 = scmp.ge.s32.totalorder %s1086_s22, 2  ;;  %s574_s28 = sand.u32 1, %s1058_s15  }
 0x1c5   : > { %s575_s4 = scalar_lea.sflag [#allocation6], %s574_s28 }
 0x1c6   : > { %p757_p10 = pnand %p764_p8, %p1229_p11 }
 0x1c8   : > { %p758_p1 = pneg %p757_p10 }
 0x1ca   : > { %1037 = dma.done.wait (%p758_p1), %s575_s4, 256  }
 0x1cb   : > { %1039 = vsyncadd (%p758_p1), %s575_s4, 4294967040  ;;  %s1515_s5 = sld [smem:[#allocation16_spill]] }
 0x1cc   : > { %s1516_s6 = sld [smem:[#allocation26_spill]] }
 0x1d1   : > { %s583_s23 = sand.u32 1, %s1515_s5  }
 0x1d2   : > { %p1517_p2 = scmp.ne.s32.totalorder %s1516_s6, 0  ;;  %s584_s21 = scalar_lea.sflag [#allocation11], %s583_s23 }
 0x1d4   : > { %p760_p12 = pnand %p764_p8, %p1517_p2 }
 0x1d6   : > { %p761_p6 = pneg %p760_p12 }
 0x1d8   : > { %1041 = dma.done.wait (%p761_p6), %s584_s21, 256  }
 0x1d9   : > { %1043 = vsyncadd (%p761_p6), %s584_s21, 4294967040  ;;  %s26_s22 = sadd.s32 1, %s1086_s22   ;;  %s1518_s15 = sld [smem:[#allocation17_spill]] }
 0x1da   : > { %p23_p3 = scmp.ge.s32.totalorder %s26_s22, 20   ;;  %s1519_s14 = sld [smem:[#allocation24_spill]] }
 0x1db   : > { %s1520_s26 = sld [smem:[#allocation18_spill]]  ;;  %s1526_s12 = smov %s1050_s13 }
 0x1dc   : > { %s1521_s17 = sld [smem:[#allocation25_spill]] }
 0x1dd   : > { %s1522_s18 = sld [smem:[#allocation19_spill]]  ;;  %25 = sbr.rel (!%p23_p3) target bundleno = 15 (0xf), region = 112 }
 0x1de   : > { %s1523_s19 = sld [smem:[#allocation20_spill]] }
 0x1df   : > { %s1524_s20 = sld [smem:[#allocation21_spill]]  ;;  %s1527_s13 = smov %s1518_s15 }
 0x1e0   : > { %s1525_s21 = sld [smem:[#allocation22_spill]]  ;;  %s1528_s15 = smov %s1062_s16 }
 0x1e1   : > { %s1529_s16 = smov %s1520_s26 }
 0x1e2   :  { %589 = vsyncpa [#allocation5], 1 }
 0x1e3   :  { %591 = vsyncpa [#allocation5 + $0x1], 1 }
 0x1e4   :  { %592 = vsyncpa [#allocation8], 1 }
 0x1e5   :  { %594 = vsyncpa [#allocation8 + $0x1], 1 }
 0x1e6   :  { %595 = vsyncpa [#allocation6], 1 }
 0x1e7   :  { %597 = vsyncpa [#allocation6 + $0x1], 1 }
 0x1e8   :  { %598 = vsyncpa [#allocation11], 1 }
 0x1e9   :  { %600 = vsyncpa [#allocation11 + $0x1], 1 }

</bundles_post_ra>
